<compile_context>
chip_gen: v6e
topology: v6e:2x2x1
jax: 0.10.0
libtpu: 0.0.40
codegen_flags: <defaults>
</compile_context>

<pallas_src>
import functools

import jax
import jax.numpy as jnp
import numpy as np
from jax.experimental import pallas as pl
from jax.experimental.pallas import tpu as pltpu


def _cnn_kernel(xw_ref, w_ref, b_ref, mask_ref, out_ref, *, bb, l_out_pad):
    """Fused 3-branch conv1d + ReLU + global max-pool for one batch block.

    xw_ref  : (bb, l_out_pad, K_max*E)  pre-packed im2col windows (lane-dense)
    w_ref   : (K_max*E, F_pad)          all branches packed; missing taps are zeros
    b_ref   : (1, F_pad)                packed biases (zeros in pad columns)
    mask_ref: (l_out_pad, F_pad)        1.0 where the time position is valid for
                                        the branch owning that filter column
    out_ref : (bb, 1, F_pad)            lane-dense pooled output
    """
    ke = xw_ref.shape[-1]
    f_pad = w_ref.shape[-1]

    # Fold the batch block into the matmul M dimension -> one MXU matmul.
    # l_out_pad is a multiple of 8, so this reshape is sublane-aligned (free).
    windows2d = xw_ref[...].reshape(bb * l_out_pad, ke)
    acc = jnp.dot(windows2d, w_ref[...],
                  preferred_element_type=jnp.float32)          # (bb*L, F_pad) f32
    acc = acc.reshape(bb, l_out_pad, f_pad) + b_ref[...][None]

    relu = jnp.maximum(acc, 0.0)
    # ReLU output >= 0 and every branch has >= 1 valid position (L >= k_max is
    # asserted in the wrapper), so zeroing invalid/padded positions does not
    # change the per-branch max.
    pooled = jnp.max(relu * mask_ref[...][None], axis=1, keepdims=True)
    out_ref[...] = pooled.astype(out_ref.dtype)                # one lane-dense store


def cnn_forward(x, conv_weights, conv_biases, *, use_bf16=True):
    """CNN forward.

    x            : (B, L, E)  — embedding BEFORE the module's .transpose(1, 2)
    conv_weights : list of PyTorch-layout Conv1d weights, each (F_i, E, K_i)
    conv_biases  : list of biases, each (F_i,)
    returns      : (B, sum(F_i))
    """
    B, L, E = x.shape
    out_dtype = x.dtype
    filter_sizes = [int(w.shape[2]) for w in conv_weights]
    num_filters = [int(w.shape[0]) for w in conv_weights]
    k_max, k_min = max(filter_sizes), min(filter_sizes)
    assert L >= k_max, (
        f"sequence length {L} must be >= largest filter size {k_max} "
        "(PyTorch Conv1d would error here)")
    f_total = sum(num_filters)
    f_pad = ((f_total + 127) // 128) * 128       # lane-dense output width
    l_out = L - k_min + 1                        # widest branch's conv length
    l_out_pad = ((l_out + 7) // 8) * 8           # sublane-aligned M rows / batch elem
    ke = k_max * E

    # ---- pack the three branches into one weight / bias / validity mask ----
    w_packed = jnp.zeros((ke, f_pad), jnp.float32)
    b_packed = jnp.zeros((1, f_pad), jnp.float32)
    mask = jnp.zeros((l_out_pad, f_pad), jnp.float32)
    off = 0
    for w, b, k, f in zip(conv_weights, conv_biases, filter_sizes, num_filters):
        # (F, E, K) -> (K, E, F) -> (K*E, F): row k*E+e, col f  ==  w[f, e, k]
        wt = jnp.transpose(w, (2, 1, 0)).reshape(k * E, f).astype(jnp.float32)
        w_packed = w_packed.at[:k * E, off:off + f].set(wt)
        b_packed = b_packed.at[0, off:off + f].set(b.astype(jnp.float32))
        mask = mask.at[:L - k + 1, off:off + f].set(1.0)
        off += f

    # ---- im2col in the wrapper: lane-dense (B, l_out_pad, K_max*E) windows ----
    # windows[b, t, k*E + e] == x[b, t + k, e]  (zero-padded past the sequence)
    x_pad = jnp.pad(x, ((0, 0), (0, l_out_pad + k_max - 1 - L), (0, 0)))
    windows = jnp.concatenate(
        [x_pad[:, k:k + l_out_pad, :] for k in range(k_max)], axis=-1)

    compute_dtype = jnp.bfloat16 if use_bf16 else jnp.float32
    windows = windows.astype(compute_dtype)      # stream bf16 (half the DMA bytes)
    w_packed = w_packed.astype(compute_dtype)    # resident bf16 weights

    # ---- adaptive grid: one step for small B; ~256 matmul rows/block otherwise ---
    rows_target = 256                             # MXU pass height on v6e/v7x
    bb_cap = max(1, rows_target // l_out_pad)
    if B <= bb_cap:
        nb, bb = 1, B                             # B=2 case: a single grid step
    else:
        # >=4 blocks so both v7x TensorCores get work and still pipeline.
        bb = max(1, min(bb_cap, pl.cdiv(B, 4)))
        nb = pl.cdiv(B, bb)
    b_pad = nb * bb
    if b_pad != B:
        windows = jnp.pad(windows, ((0, b_pad - B), (0, 0), (0, 0)))

    kernel = functools.partial(_cnn_kernel, bb=bb, l_out_pad=l_out_pad)

    out = pl.pallas_call(
        kernel,
        out_shape=jax.ShapeDtypeStruct((b_pad, 1, f_pad), out_dtype),
        grid_spec=pltpu.PrefetchScalarGridSpec(
            num_scalar_prefetch=0,
            grid=(nb,),
            in_specs=[
                pl.BlockSpec((bb, l_out_pad, ke), lambda i: (i, 0, 0)),
                # constant index_maps: weights/bias/mask are loaded once and stay
                # resident in VMEM across grid steps (no per-step re-DMA).
                pl.BlockSpec((ke, f_pad), lambda i: (0, 0)),
                pl.BlockSpec((1, f_pad), lambda i: (0, 0)),
                pl.BlockSpec((l_out_pad, f_pad), lambda i: (0, 0)),
            ],
            out_specs=pl.BlockSpec((bb, 1, f_pad), lambda i: (i, 0, 0)),
        ),
        compiler_params=pltpu.CompilerParams(
            dimension_semantics=("parallel",)),
    )(windows, w_packed, b_packed, mask)

    return out[:B, 0, :f_total]                   # (B, F_total)


def cnn_reference(x, conv_weights, conv_biases):
    """Pure-JAX mirror of the PyTorch forward (Conv1d stride 1, no padding)."""
    outs = []
    for w, b in zip(conv_weights, conv_biases):
        f, e, k = w.shape
        l_out = x.shape[1] - k + 1
        acc = jnp.zeros((x.shape[0], l_out, f), jnp.float32) + b[None, None, :]
        for kk in range(k):
            acc = acc + jnp.einsum('ble,ef->blf', x[:, kk:kk + l_out, :],
                                   jnp.transpose(w[:, :, kk]),
                                   preferred_element_type=jnp.float32)
        outs.append(jnp.max(jnp.maximum(acc, 0.0), axis=1))
    return jnp.concatenate(outs, axis=1)


if __name__ == "__main__":
    # Small shapes consistent with the module's forward.
    B, L, E = 2, 16, 32                      # batch, seq_len, embed_dim
    filter_sizes = [3, 4, 5]
    num_filters = [10, 10, 10]
    # scicite config: paddings=[0,0,0], padding_mode='zeros', strides=[1,1,1]

    key = jax.random.PRNGKey(0)
    kx, *kws = jax.random.split(key, 1 + 2 * len(filter_sizes))
    x = jax.random.normal(kx, (B, L, E), dtype=jnp.float32)

    conv_weights, conv_biases = [], []
    for i, (k, f) in enumerate(zip(filter_sizes, num_filters)):
        conv_weights.append(
            jax.random.normal(kws[2 * i], (f, E, k), dtype=jnp.float32) * 0.05)
        conv_biases.append(
            jax.random.normal(kws[2 * i + 1], (f,), dtype=jnp.float32) * 0.05)

    ref = cnn_reference(x, conv_weights, conv_biases)

    # Strict f32 validation path.
    out_f32 = jax.block_until_ready(
        cnn_forward(x, conv_weights, conv_biases, use_bf16=False))
    assert out_f32.shape == (B, sum(num_filters)), out_f32.shape
    np.testing.assert_allclose(np.asarray(out_f32), np.asarray(ref),
                               rtol=1e-5, atol=1e-5)

    # Default perf path: bf16 MXU operands (f32 accumulate) -> relaxed tolerance.
    out = jax.block_until_ready(cnn_forward(x, conv_weights, conv_biases))
    assert out.shape == (B, sum(num_filters)), out.shape
    np.testing.assert_allclose(np.asarray(out), np.asarray(ref),
                               rtol=2e-2, atol=2e-2)

    print("KERNEL_OK")
</pallas_src>

<mosaic_0001>
module attributes {stable_mosaic.version = 11 : i64} {
  func.func @_cnn_kernel(%arg0: i32, %arg1: memref<2x16x160xf32, #tpu.memory_space<vmem>>, %arg2: memref<160x128xf32, #tpu.memory_space<vmem>>, %arg3: memref<1x128xf32, #tpu.memory_space<vmem>>, %arg4: memref<16x128xf32, #tpu.memory_space<vmem>>, %arg5: memref<2x1x128xf32, #tpu.memory_space<vmem>>) attributes {dimension_semantics = [#tpu.dimension_semantics<parallel>], iteration_bounds = array<i64: 1>, scalar_prefetch = 0 : i64, scratch_operands = 0 : i64, tpu.core_type = #tpu.core_type<tc>, window_params = [{transform_indices = @transform_0, window_bounds = array<i64: 2, 16, 160>}, {pipeline_mode = #tpu.pipeline_mode<synchronous>, transform_indices = @transform_1, window_bounds = array<i64: 160, 128>}, {pipeline_mode = #tpu.pipeline_mode<synchronous>, transform_indices = @transform_2, window_bounds = array<i64: 1, 128>}, {pipeline_mode = #tpu.pipeline_mode<synchronous>, transform_indices = @transform_3, window_bounds = array<i64: 16, 128>}, {transform_indices = @transform_4, window_bounds = array<i64: 2, 1, 128>}]} {
    %c0 = arith.constant 0 : index
    %c0_0 = arith.constant 0 : index
    %c0_1 = arith.constant 0 : index
    %0 = vector.load %arg1[%c0, %c0_0, %c0_1] : memref<2x16x160xf32, #tpu.memory_space<vmem>>, vector<2x16x160xf32>
    %1 = vector.shape_cast %0 : vector<2x16x160xf32> to vector<32x160xf32>
    %c0_2 = arith.constant 0 : index
    %c0_3 = arith.constant 0 : index
    %2 = vector.load %arg2[%c0_2, %c0_3] : memref<160x128xf32, #tpu.memory_space<vmem>>, vector<160x128xf32>
    %cst = arith.constant dense<0.000000e+00> : vector<32x128xf32>
    %3 = tpu.matmul %1, %2, %cst {dimension_numbers = #tpu.dot_dimension_numbers<[1], [0], [0], [1], [0, 0, 1, 1], [], []>} : vector<32x160xf32>, vector<160x128xf32>, vector<32x128xf32> -> vector<32x128xf32>
    %4 = vector.shape_cast %3 : vector<32x128xf32> to vector<2x16x128xf32>
    %c0_4 = arith.constant 0 : index
    %c0_5 = arith.constant 0 : index
    %5 = vector.load %arg3[%c0_4, %c0_5] : memref<1x128xf32, #tpu.memory_space<vmem>>, vector<1x128xf32>
    %6 = vector.shape_cast %5 : vector<1x128xf32> to vector<1x1x128xf32>
    %7 = vector.broadcast %6 : vector<1x1x128xf32> to vector<2x16x128xf32>
    %8 = arith.addf %4, %7 : vector<2x16x128xf32>
    %cst_6 = arith.constant 0.000000e+00 : f32
    %9 = vector.broadcast %cst_6 : f32 to vector<2x16x128xf32>
    %10 = arith.maximumf %8, %9 : vector<2x16x128xf32>
    %c0_7 = arith.constant 0 : index
    %c0_8 = arith.constant 0 : index
    %11 = vector.load %arg4[%c0_7, %c0_8] : memref<16x128xf32, #tpu.memory_space<vmem>>, vector<16x128xf32>
    %12 = vector.shape_cast %11 : vector<16x128xf32> to vector<1x16x128xf32>
    %13 = vector.broadcast %12 : vector<1x16x128xf32> to vector<2x16x128xf32>
    %14 = arith.mulf %10, %13 : vector<2x16x128xf32>
    %cst_9 = arith.constant dense<0xFF800000> : vector<2x128xf32>
    %15 = vector.multi_reduction <maximumf>, %14, %cst_9 [1] : vector<2x16x128xf32> to vector<2x128xf32>
    %16 = vector.shape_cast %15 : vector<2x128xf32> to vector<2x1x128xf32>
    %c0_10 = arith.constant 0 : index
    %c0_11 = arith.constant 0 : index
    %c0_12 = arith.constant 0 : index
    %17 = vector.load %arg5[%c0_10, %c0_11, %c0_12] : memref<2x1x128xf32, #tpu.memory_space<vmem>>, vector<2x1x128xf32>
    tpu.vector_store %arg5[%c0_10, %c0_11, %c0_12], %16 {strides = array<i32>} : memref<2x1x128xf32, #tpu.memory_space<vmem>>, vector<2x1x128xf32>,
    return
  }
  func.func @transform_0(%arg0: i32) -> (i32, i32, i32) {
    %c0_i32 = arith.constant 0 : i32
    %c0_i32_0 = arith.constant 0 : i32
    %c0_i32_1 = arith.constant 0 : i32
    return %arg0, %c0_i32, %c0_i32_0 : i32, i32, i32
  }
  func.func @transform_1(%arg0: i32) -> (i32, i32) {
    %c0_i32 = arith.constant 0 : i32
    %c0_i32_0 = arith.constant 0 : i32
    %c0_i32_1 = arith.constant 0 : i32
    return %c0_i32, %c0_i32_0 : i32, i32
  }
  func.func @transform_2(%arg0: i32) -> (i32, i32) {
    %c0_i32 = arith.constant 0 : i32
    %c0_i32_0 = arith.constant 0 : i32
    %c0_i32_1 = arith.constant 0 : i32
    return %c0_i32, %c0_i32_0 : i32, i32
  }
  func.func @transform_3(%arg0: i32) -> (i32, i32) {
    %c0_i32 = arith.constant 0 : i32
    %c0_i32_0 = arith.constant 0 : i32
    %c0_i32_1 = arith.constant 0 : i32
    return %c0_i32, %c0_i32_0 : i32, i32
  }
  func.func @transform_4(%arg0: i32) -> (i32, i32, i32) {
    %c0_i32 = arith.constant 0 : i32
    %c0_i32_0 = arith.constant 0 : i32
    %c0_i32_1 = arith.constant 0 : i32
    return %arg0, %c0_i32, %c0_i32_0 : i32, i32, i32
  }
}

</mosaic_0001>

<bundles_post_ra>
// kernel: tpu_custom_call.1
= control target key start
LH: loop header
LB: loop body
LE: loop exit
PB: predicated region body
PF: predicated region fallthrough
CT: control target
= control target key end

     0   :  { %9 = vsyncpa [#allocation3], 0  ;;  %s474_s0 = inlined_call_operand.hbm [shape: f32[2,16,160], index: 0, kind: input, shape index: {}]   ;;  %s475_s1 = inlined_call_operand.hbm [shape: f32[160,128], index: 1, kind: input, shape index: {}]   ;;  %s476_s2 = inlined_call_operand.vmem [shape: f32[1,128], index: 2, kind: input, shape index: {}]   ;;  %s477_s3 = inlined_call_operand.hbm [shape: f32[16,128], index: 3, kind: input, shape index: {}]   ;;  %s478_s4 = inlined_call_operand.hbm [shape: f32[2,1,128], index: 4, kind: output, shape index: {}]  }
   0x1   :  { %10 = vsyncpa [#allocation6], 0 }
   0x2   :  { %11 = vsyncpa [#allocation4], 0  ;;  %s381_s15 = smov [#allocation5]  }
   0x3   :  { %s29_s16 = sshll.u32 %s381_s15, 4  ;;  %s30_s16 = int_to_ptr.vmem [resolvable:$true] %s29_s16 }
   0x4   :  { %s303_s17 = scalar_lea.vmem %s30_s16, 2560  ;;  %p308_p1 = scmp.lt.s32.totalorder %s30_s16, %s30_s16 }
   0x5   :  { %p304_p0 = scmp.ne.s32.totalorder %s30_s16, %s303_s17  ;;  %p309_p2 = scmp.lt.s32.totalorder %s303_s17, %s303_s17 }
   0x7   :  { %p310_p3 = por %p309_p2, %p308_p1 }
   0x9   :  { %p311_p4 = pnand %p310_p3, %p304_p0 }
   0xb   :  { %314 = shalt.err (!%p311_p4)
}
   0xc   :  { %s382_s18 = smov 128   ;;  %s383_s19 = smov 8  }
   0xd   :  { %35 = dma.hbm_to_vmem [thread:$0]  %s475_s1, 2560, %s30_s16, [#allocation6], %s382_s18, %s382_s18, %s383_s19  }
   0xe   :  { %s384_s22 = smov [#allocation2]  }
   0xf   :  { %s17_s23 = sshll.u32 %s384_s22, 4  ;;  %s18_s23 = int_to_ptr.vmem [resolvable:$true] %s17_s23 }
  0x10   :  { %s323_s24 = scalar_lea.vmem %s18_s23, 1024  ;;  %p328_p6 = scmp.lt.s32.totalorder %s18_s23, %s18_s23 }
  0x11   :  { %p324_p5 = scmp.ne.s32.totalorder %s18_s23, %s323_s24  ;;  %p329_p7 = scmp.lt.s32.totalorder %s323_s24, %s323_s24 }
  0x13   :  { %p330_p8 = por %p329_p7, %p328_p6 }
  0x15   :  { %p331_p9 = pnand %p330_p8, %p324_p5 }
  0x17   :  { %334 = shalt.err (!%p331_p9)
}
  0x18   :  { %s385_s25 = smov 256   ;;  %s386_s26 = smov 16  }
  0x19   :  { %23 = dma.hbm_to_vmem [thread:$0]  %s474_s0, 1024, %s18_s23, [#allocation3], %s385_s25, %s385_s25, %s386_s26  }
  0x1a   :  { %s387_s29 = smov [#allocation7]  }
  0x1b   :  { %s43_s30 = sshll.u32 %s387_s29, 4  ;;  %s44_s30 = int_to_ptr.vmem [resolvable:$true] %s43_s30 }
  0x1c   :  { %s343_s1 = scalar_lea.vmem %s44_s30, 256  ;;  %p348_p11 = scmp.lt.s32.totalorder %s44_s30, %s44_s30 }
  0x1d   :  { %p344_p10 = scmp.ne.s32.totalorder %s44_s30, %s343_s1  ;;  %p349_p12 = scmp.lt.s32.totalorder %s343_s1, %s343_s1 }
  0x1f   :  { %p350_p13 = por %p349_p12, %p348_p11 }
  0x21   :  { %p351_p0 = pnand %p350_p13, %p344_p10 }
  0x23   :  { %354 = shalt.err (!%p351_p0)
}
  0x24   :  { %49 = dma.hbm_to_vmem [thread:$0]  %s477_s3, 256, %s44_s30, [#allocation6], %s382_s18, %s382_s18, %s383_s19  }
  0x25   :  { %375 = dma.done.wait [#allocation3], 1024  }
  0x26   :  { %376 = vsyncadd [#allocation3], 4294966272 }
  0x27   :  { %377 = dma.done.wait [#allocation6], 2816  }
  0x28   :  { %378 = vsyncadd [#allocation6], 4294964480  ;;  %v388_v0 = vmov 0.0   ;;  %v82_v1 = vld [vmem:[#allocation5 + $0x78] sm:$0xff]  ;;  %v81_v2 = vld [vmem:[#allocation5 + $0x70] sm:$0xff]  ;;  %vm87_vm0 = vcmask 261120  }
  0x29   :  { %100 = vmatprep.subr.mxu0 %v388_v0  ;;  %245 = vmatprep.subr.mxu1 %v388_v0  ;;  %v80_v3 = vld [vmem:[#allocation5 + $0x68] sm:$0xff]  ;;  %v79_v4 = vld [vmem:[#allocation5 + $0x60] sm:$0xff]  ;;  %v78_v5 = vld [vmem:[#allocation5 + $0x58] sm:$0xff] }
  0x2a   :  { %101 = vmatpush1.msra.mxu0 %v82_v1  ;;  %265 = vmatpush1.msra.mxu1 %v82_v1  ;;  %v77_v6 = vld [vmem:[#allocation5 + $0x50] sm:$0xff]  ;;  %v76_v7 = vld [vmem:[#allocation5 + $0x48] sm:$0xff]  ;;  %v75_v8 = vld [vmem:[#allocation5 + $0x40] sm:$0xff] }
  0x2b   :  { %102 = vmatprep.subr.mxu0 %v388_v0  ;;  %246 = vmatprep.subr.mxu1 %v388_v0  ;;  %v74_v9 = vld [vmem:[#allocation5 + $0x38] sm:$0xff]  ;;  %v73_v10 = vld [vmem:[#allocation5 + $0x30] sm:$0xff]  ;;  %v72_v11 = vld [vmem:[#allocation5 + $0x28] sm:$0xff] }
  0x2c   :  { %103 = vmatpush1.msra.mxu0 %v81_v2  ;;  %266 = vmatpush1.msra.mxu1 %v81_v2  ;;  %v71_v12 = vld [vmem:[#allocation5 + $0x20] sm:$0xff]  ;;  %v70_v13 = vld [vmem:[#allocation5 + $0x18] sm:$0xff]  ;;  %v69_v14 = vld [vmem:[#allocation5 + $0x10] sm:$0xff] }
  0x2d   :  { %104 = vmatprep.subr.mxu0 %v388_v0  ;;  %247 = vmatprep.subr.mxu1 %v388_v0  ;;  %v68_v15 = vld [vmem:[#allocation5 + $0x8] sm:$0xff]  ;;  %v67_v16 = vld [vmem:[#allocation5] sm:$0xff]  ;;  %v86_v17 = vld [vmem:[#allocation5 + $0x98] sm:$0xff] }
  0x2e   :  { %105 = vmatpush1.msra.mxu0 %v80_v3  ;;  %267 = vmatpush1.msra.mxu1 %v80_v3  ;;  %v85_v18 = vld [vmem:[#allocation5 + $0x90] sm:$0xff]  ;;  %v84_v19 = vld [vmem:[#allocation5 + $0x88] sm:$0xff]  ;;  %v83_v20 = vld [vmem:[#allocation5 + $0x80] sm:$0xff] }
  0x2f   :  { %106 = vmatprep.subr.mxu0 %v388_v0  ;;  %248 = vmatprep.subr.mxu1 %v388_v0  ;;  %v60_v21 = vld [vmem:[#allocation2 + $0x8] sm:$0xff]  ;;  %v59_v23 = vld [vmem:[#allocation2] sm:$0xff]  ;;  %v62_v25 = vld [vmem:[#allocation2 + $0x18] sm:$0xff] }
  0x30   :  { %107 = vmatpush1.msra.mxu0 %v79_v4  ;;  %268 = vmatpush1.msra.mxu1 %v79_v4  ;;  %v64_v22 = vld [vmem:[#allocation2 + $0x28] sm:$0xff]  ;;  %v63_v24 = vld [vmem:[#allocation2 + $0x20] sm:$0xff]  ;;  %v66_v26 = vld [vmem:[#allocation2 + $0x38] sm:$0xff] }
  0x31   :  { %108 = vmatprep.subr.mxu0 %v388_v0  ;;  %249 = vmatprep.subr.mxu1 %v388_v0  ;;  %v61_v27 = vld [vmem:[#allocation2 + $0x10] sm:$0xff]  ;;  %v244_v29 = vld [vmem:[%s476_s2] ss:$0 sm:$0xff]  ;;  %v201_v43 = vld [vmem:[#allocation7 + $0x8] sm:$0xff]  ;;  %s389_s2 = smov [#allocation8]  }
  0x32   :  { %109 = vmatpush1.msra.mxu0 %v78_v5  ;;  %269 = vmatpush1.msra.mxu1 %v78_v5  ;;  %v65_v28 = vld [vmem:[#allocation2 + $0x30] sm:$0xff]  ;;  %v200_v42 = vld [vmem:[#allocation7] sm:$0xff]  ;;  %s227_s7 = sshll.u32 %s389_s2, 4  ;;  %s228_s7 = int_to_ptr.vmem [resolvable:$true] %s227_s7 }
  0x33   :  { %110 = vmatprep.subr.mxu0 %v388_v0  ;;  %250 = vmatprep.subr.mxu1 %v388_v0  ;;  %s355_s8 = scalar_lea.vmem %s228_s7, 32  ;;  %p360_p2 = scmp.lt.s32.totalorder %s228_s7, %s228_s7 }
  0x34   :  { %111 = vmatpush1.msra.mxu0 %v77_v6  ;;  %270 = vmatpush1.msra.mxu1 %v77_v6  ;;  %p356_p1 = scmp.ne.s32.totalorder %s228_s7, %s355_s8  ;;  %p361_p3 = scmp.lt.s32.totalorder %s355_s8, %s355_s8 }
  0x35   :  { %112 = vmatprep.subr.mxu0 %v388_v0  ;;  %251 = vmatprep.subr.mxu1 %v388_v0 }
  0x36   :  { %113 = vmatpush1.msra.mxu0 %v76_v7  ;;  %271 = vmatpush1.msra.mxu1 %v76_v7  ;;  %p362_p4 = por %p361_p3, %p360_p2 }
  0x37   :  { %114 = vmatprep.subr.mxu0 %v388_v0  ;;  %252 = vmatprep.subr.mxu1 %v388_v0 }
  0x38   :  { %115 = vmatpush1.msra.mxu0 %v75_v8  ;;  %272 = vmatpush1.msra.mxu1 %v75_v8  ;;  %p363_p5 = pnand %p362_p4, %p356_p1 }
  0x39   :  { %116 = vmatprep.subr.mxu0 %v388_v0  ;;  %253 = vmatprep.subr.mxu1 %v388_v0 }
  0x3a   :  { %117 = vmatpush1.msra.mxu0 %v74_v9  ;;  %273 = vmatpush1.msra.mxu1 %v74_v9 }
  0x3b   :  { %118 = vmatprep.subr.mxu0 %v388_v0  ;;  %254 = vmatprep.subr.mxu1 %v388_v0 }
  0x3c   :  { %119 = vmatpush1.msra.mxu0 %v73_v10  ;;  %274 = vmatpush1.msra.mxu1 %v73_v10 }
  0x3d   :  { %120 = vmatprep.subr.mxu0 %v388_v0  ;;  %255 = vmatprep.subr.mxu1 %v388_v0 }
  0x3e   :  { %121 = vmatpush1.msra.mxu0 %v72_v11  ;;  %275 = vmatpush1.msra.mxu1 %v72_v11 }
  0x3f   :  { %122 = vmatprep.subr.mxu0 %v388_v0  ;;  %256 = vmatprep.subr.mxu1 %v388_v0 }
  0x40   :  { %123 = vmatpush1.msra.mxu0 %v71_v12  ;;  %276 = vmatpush1.msra.mxu1 %v71_v12 }
  0x41   :  { %124 = vmatprep.subr.mxu0 %v388_v0  ;;  %257 = vmatprep.subr.mxu1 %v388_v0 }
  0x42   :  { %125 = vmatpush1.msra.mxu0 %v70_v13  ;;  %277 = vmatpush1.msra.mxu1 %v70_v13 }
  0x43   :  { %126 = vmatprep.subr.mxu0 %v388_v0  ;;  %258 = vmatprep.subr.mxu1 %v388_v0 }
  0x44   :  { %127 = vmatpush1.msra.mxu0 %v69_v14  ;;  %278 = vmatpush1.msra.mxu1 %v69_v14 }
  0x45   :  { %128 = vmatprep.subr.mxu0 %v388_v0  ;;  %259 = vmatprep.subr.mxu1 %v388_v0 }
  0x46   :  { %129 = vmatpush1.msra.mxu0 %v68_v15  ;;  %279 = vmatpush1.msra.mxu1 %v68_v15 }
  0x47   :  { %130 = vmatprep.subr.mxu0 %v388_v0  ;;  %260 = vmatprep.subr.mxu1 %v388_v0 }
  0x48   :  { %131 = vmatpush1.msra.mxu0 %v67_v16  ;;  %280 = vmatpush1.msra.mxu1 %v67_v16 }
  0x49   :  { %156 = vmatprep.subr.mxu0 %v388_v0  ;;  %261 = vmatprep.subr.mxu1 %v388_v0 }
  0x4a   :  { %157 = vmatpush2.msra.mxu0 %v86_v17  ;;  %281 = vmatpush2.msra.mxu1 %v86_v17 }
  0x4b   :  { %158 = vmatprep.subr.mxu0 %v388_v0  ;;  %262 = vmatprep.subr.mxu1 %v388_v0 }
  0x4c   :  { %159 = vmatpush2.msra.mxu0 %v85_v18  ;;  %282 = vmatpush2.msra.mxu1 %v85_v18 }
  0x4d   :  { %160 = vmatprep.subr.mxu0 %v388_v0  ;;  %263 = vmatprep.subr.mxu1 %v388_v0 }
  0x4e   :  { %161 = vmatpush2.msra.mxu0 %v84_v19  ;;  %283 = vmatpush2.msra.mxu1 %v84_v19 }
  0x4f   :  { %162 = vmatprep.subr.mxu0 %v388_v0  ;;  %264 = vmatprep.subr.mxu1 %v388_v0 }
  0x50   :  { %163 = vmatpush2.msra.mxu0 %v83_v20  ;;  %284 = vmatpush2.msra.mxu1 %v83_v20 }
  0x51   :  { %240 = vmatprep.mubr.msk.f32.mxu0 %vm87_vm0, %v60_v21  ;;  %242 = vmatprep.mubr.msk.f32.mxu1 %vm87_vm0, %v64_v22 }
  0x52   :  { %165 = vmatmul.mubr.f32.vlgmr.msra.gmra.mxu0 %v59_v23  ;;  %175 = vmatmul.mubr.f32.vlgmr.msra.gmra.mxu1 %v63_v24 }
  0x53   :  { %241 = vmatprep.mubr.msk.f32.mxu0 %vm87_vm0, %v62_v25  ;;  %243 = vmatprep.mubr.msk.f32.mxu1 %vm87_vm0, %v66_v26 }
  0x56   :  { %170 = vmatmul.mubr.f32.gmra.mxu0 %v61_v27  ;;  %180 = vmatmul.mubr.f32.gmra.mxu1 %v65_v28 }
 0x112   :  { %v166_v30 = vpop.f32.mrf.mxu0  ;;  %v176_v31 = vpop.f32.mrf.mxu1 }
 0x113   :  { %v192_v32 = vadd.f32 %v244_v29, %v166_v30  ;;  %v194_v33 = vadd.f32 %v244_v29, %v176_v31 }
 0x114   :  { %v168_v34 = vpop.f32.mrf.mxu0  ;;  %v178_v35 = vpop.f32.mrf.mxu1 }
 0x115   :  { %v196_v38 = vmax.f32 %v192_v32, 0.0  ;;  %v198_v39 = vmax.f32 %v194_v33, 0.0 }
 0x116   :  { %v171_v36 = vpop.f32.mrf.mxu0  ;;  %v181_v37 = vpop.f32.mrf.mxu1 }
 0x117   :  { %v193_v40 = vadd.f32 %v244_v29, %v171_v36  ;;  %v195_v41 = vadd.f32 %v244_v29, %v181_v37  ;;  %v202_v48 = vmul.f32 %v200_v42, %v196_v38  ;;  %v204_v49 = vmul.f32 %v200_v42, %v198_v39 }
 0x118   :  { %v173_v44 = vpop.f32.mrf.mxu0  ;;  %v183_v45 = vpop.f32.mrf.mxu1 }
 0x119   :  { %v197_v46 = vmax.f32 %v193_v40, 0.0  ;;  %v199_v47 = vmax.f32 %v195_v41, 0.0 }
 0x11b   :  { %v203_v50 = vmul.f32 %v201_v43, %v197_v46  ;;  %v205_v51 = vmul.f32 %v201_v43, %v199_v47 }
 0x11d   :  { %v206_v52 = vmax.f32 %v202_v48, %v203_v50  ;;  %v213_v53 = vmax.f32 %v204_v49, %v205_v51 }
 0x11f   :  { %v207_v54 = vrot.slane %v206_v52, 4  ;;  %v214_v55 = vrot.slane %v213_v53, 4 }
 0x121   :  { %v208_v56 = vmax.f32 %v206_v52, %v207_v54  ;;  %v215_v57 = vmax.f32 %v213_v53, %v214_v55 }
 0x123   :  { %v209_v58 = vrot.slane %v208_v56, 2  ;;  %v216_v59 = vrot.slane %v215_v57, 2 }
 0x125   :  { %v210_v60 = vmax.f32 %v208_v56, %v209_v58  ;;  %v217_v61 = vmax.f32 %v215_v57, %v216_v59 }
 0x127   :  { %v211_v62 = vrot.slane %v210_v60, 1  ;;  %v218_v63 = vrot.slane %v217_v61, 1 }
 0x129   :  { %v212_v0 = vmax.f32 %v210_v60, %v211_v62  ;;  %v219_v1 = vmax.f32 %v217_v61, %v218_v63 }
 0x12b   :  { %220 = vst [vmem:[#allocation8] sm:$0x1] %v212_v0  ;;  %221 = vst [vmem:[#allocation8 + $0x1] sm:$0x1] %v219_v1 }
 0x12c   :  { %366 = shalt.err (!%p363_p5)
}
 0x12d   :  { %s390_s9 = smov 1  }
 0x12e   :  { %233 = dma.vmem_to_hbm [thread:$0]  %s228_s7, 32, %s478_s4, [#allocation4], %s386_s26, %s386_s26, %s390_s9  }
 0x12f   :  { %379 = dma.done.wait [#allocation4], 32  }
 0x130   :  { %380 = vsyncadd [#allocation4], 4294967264 }
 0x131   :  { %237 = vsyncpa [#allocation3], 1 }
 0x132   :  { %238 = vsyncpa [#allocation6], 1 }
 0x133   :  { %239 = vsyncpa [#allocation4], 1 }

</bundles_post_ra>
